<compile_context>
chip_gen: v6e
topology: v6e:2x2x1
jax: 0.10.0
libtpu: 0.0.40
codegen_flags: <defaults>
</compile_context>

<pallas_src>
import functools

import jax
import jax.numpy as jnp
from jax.experimental import pallas as pl
from jax.experimental.pallas import tpu as pltpu


def _round_up(x, m):
    return ((x + m - 1) // m) * m


def _unnormalize(g, dim):
    # align_corners=False un-normalization + padding_mode='border' clamp
    d = float(dim)
    return jnp.clip(((g + 1.0) * d - 1.0) * 0.5, 0.0, d - 1.0)


def _small_level_slab(u, v, dim, kpad):
    """Dense tent-product slab for tiny levels (dim < 8): (kpad, TN).

    Row k maps to texel (row, col) = (k >> log2(dim), k & (dim-1)); padded rows
    (row >= dim) get exactly zero weight because |row - y| >= 1 after clamping.
    """
    x = _unnormalize(u, dim)                                   # (1, TN)
    y = _unnormalize(v, dim)                                   # (1, TN)
    shift = dim.bit_length() - 1                               # log2(dim)
    k = jax.lax.broadcasted_iota(jnp.int32, (kpad, 1), 0)
    row = (k >> shift).astype(jnp.float32)                     # (kpad, 1)
    col = (k & (dim - 1)).astype(jnp.float32)                  # (kpad, 1)
    fy = jnp.maximum(0.0, 1.0 - jnp.abs(row - y))              # (kpad, TN)
    fx = jnp.maximum(0.0, 1.0 - jnp.abs(col - x))              # (kpad, TN)
    return fy * fx


def _big_level_slab(u, v, dim, r_ref):
    """Factored tent build for dim >= 8: O(dim*TN) VALU + 1 mul per slab element."""
    x = _unnormalize(u, dim)                                   # (1, TN)
    y = _unnormalize(v, dim)                                   # (1, TN)
    idx = jax.lax.broadcasted_iota(jnp.int32, (dim, 1), 0).astype(jnp.float32)
    fx = jnp.maximum(0.0, 1.0 - jnp.abs(idx - x))              # (dim, TN) column tents
    fy = jnp.maximum(0.0, 1.0 - jnp.abs(idx - y))              # (dim, TN) row tents
    # sublane "repeat each row dim times" on the MXU (one-hot expansion matrix,
    # host-built, grid-constant); column factor tiled with cheap copies.
    fy_rep = jnp.dot(r_ref[...], fy,
                     preferred_element_type=jnp.float32)       # (dim*dim, TN)
    fx_til = jnp.concatenate([fx] * dim, axis=0)               # (dim*dim, TN)
    return fy_rep * fx_til                                     # row k -> (k//dim, k%dim)


def _hier_tex_kernel(*refs, dims, kpads, n_big, matmul_dtype):
    n_lvl = len(dims)
    uv_ref = refs[0]
    tex_refs = refs[1:1 + n_lvl]
    r_refs = refs[1 + n_lvl:1 + n_lvl + n_big]
    out_ref = refs[1 + n_lvl + n_big]

    u = uv_ref[0:1, :]                                         # (1, TN)  x / width
    v = uv_ref[1:2, :]                                         # (1, TN)  y / height

    acc = None
    for lvl, (dim, kpad) in enumerate(zip(dims, kpads)):
        if dim >= 8:
            slab = _big_level_slab(u, v, dim, r_refs[lvl])     # (dim*dim, TN) f32
        else:
            slab = _small_level_slab(u, v, dim, kpad)          # (kpad, TN)    f32
        if matmul_dtype != jnp.float32:
            slab = slab.astype(matmul_dtype)
        part = jnp.dot(tex_refs[lvl][...], slab,
                       preferred_element_type=jnp.float32)     # (C, TN)
        acc = part if acc is None else acc + part
    out_ref[...] = acc.astype(out_ref.dtype)


def hierarchical_static_neural_texture(uv_inputs, data, texture_dimensions,
                                       tile_n=2048, matmul_dtype=None):
    """Forward pass equivalent to HierarchicalStaticNeuralTexture.forward."""
    b, two, H, W = uv_inputs.shape
    assert b == 1, "only implemented for batchsize==1 (matches the PyTorch module)"
    assert two == 2
    D = int(texture_dimensions)
    assert D >= 8 and (D & (D - 1)) == 0, "texture_dimensions must be a power of two >= 8"
    C = data.shape[1]
    assert data.shape[2] == 2 * D and data.shape[3] == D
    N = H * W

    dims = [D, D // 2, D // 4, D // 8]
    kpads = [max(d * d, 8) for d in dims]
    big_dims = [d for d in dims if d >= 8]

    # bf16 matmul operands only where the VMEM footprint matters (large D);
    # exact f32 otherwise.  Weight math is always f32 (v5e has no bf16 VALU).
    if matmul_dtype is None:
        matmul_dtype = jnp.bfloat16 if D >= 64 else jnp.float32
    matmul_dtype = jnp.dtype(matmul_dtype)

    # per-level textures, flattened row-major (y, x), zero-padded to kpad columns
    tex_levels = []
    off = 0
    for d, kp in zip(dims, kpads):
        t = data[0, :, off:off + d, :d].reshape(C, d * d).astype(matmul_dtype)
        if kp > d * d:
            t = jnp.pad(t, ((0, 0), (0, kp - d * d)))
        tex_levels.append(t)
        off += d

    # host-built one-hot "repeat each row dim times" expansion matrices (f32, grid-constant)
    r_mats = [
        (jnp.arange(d * d, dtype=jnp.int32)[:, None] // d
         == jnp.arange(d, dtype=jnp.int32)[None, :]).astype(jnp.float32)
        for d in big_dims
    ]

    # ---- lane-dense pixel tiling -------------------------------------------
    # round the tile to a multiple of 128 and never exceed the (padded) problem
    tile_n = max(128, _round_up(min(int(tile_n), _round_up(N, 128)), 128))
    # prefer >= 2 grid steps so v7x's two TensorCores both get work
    if N > 128:
        tile_n = min(tile_n, _round_up(pl.cdiv(N, 2), 128))
    # VMEM-aware clamp: the largest level keeps ~3 (D^2, tile_n) f32 temporaries
    # live (fy_rep, tiled fx, slab) plus double-buffered I/O and the constants.
    bytes_const = 8 * (sum(C * kp for kp in kpads) + sum(d ** 3 for d in big_dims))

    def est_vmem(tn):
        return (3 * D * D + 2 * (2 + C)) * tn * 4 + bytes_const

    budget = 36 * 1024 * 1024
    while tile_n > 128 and est_vmem(tile_n) > budget:
        tile_n -= 128
    Np = _round_up(N, tile_n)
    vmem_limit = int(min(max(32 * 1024 * 1024, est_vmem(tile_n) * 13 // 10),
                         48 * 1024 * 1024))

    # packed uv: (2, Np); row 0 = x (width), row 1 = y (height)
    uv = uv_inputs[0].reshape(2, N).astype(jnp.float32)
    if Np > N:
        uv = jnp.pad(uv, ((0, 0), (0, Np - N)), constant_values=-1.0)

    kernel = functools.partial(
        _hier_tex_kernel, dims=tuple(dims), kpads=tuple(kpads),
        n_big=len(big_dims), matmul_dtype=matmul_dtype)

    # tex/R blocks are grid-constant (index map always (0, 0)), so the pipeline
    # only fetches them once; only the uv / output tiles stream per grid step.
    in_specs = [pl.BlockSpec((2, tile_n), lambda i: (0, i))]
    in_specs += [pl.BlockSpec(t.shape, lambda i: (0, 0)) for t in tex_levels]
    in_specs += [pl.BlockSpec(r.shape, lambda i: (0, 0)) for r in r_mats]

    # TODO(synk): for D >= 64 switch the top level(s) to the fully separable
    # (row-contraction-first) formulation so the live weight data is O(D*tile_n)
    # instead of O(D^2*tile_n) and the O(D^3) one-hot expansion matmul goes away;
    # that is what keeps useful tile sizes inside v7x's 64 MiB VMEM.
    out_flat = pl.pallas_call(
        kernel,
        out_shape=jax.ShapeDtypeStruct((C, Np), jnp.float32),
        grid_spec=pltpu.PrefetchScalarGridSpec(
            num_scalar_prefetch=0,
            grid=(Np // tile_n,),
            in_specs=in_specs,
            out_specs=pl.BlockSpec((C, tile_n), lambda i: (0, i)),
        ),
        compiler_params=pltpu.CompilerParams(
            dimension_semantics=("parallel",),
            vmem_limit_bytes=vmem_limit),
    )(uv, *tex_levels, *r_mats)

    return out_flat[:, :N].reshape(1, C, H, W)


# ---------------------------------------------------------------------------
# Pure-JAX reference (mirrors torch.nn.functional.grid_sample,
# mode='bilinear', padding_mode='border', align_corners=False)
# ---------------------------------------------------------------------------
def _grid_sample_ref(tex, gx, gy):
    C, Dh, Dw = tex.shape
    x = jnp.clip(((gx + 1.0) * Dw - 1.0) * 0.5, 0.0, Dw - 1.0)
    y = jnp.clip(((gy + 1.0) * Dh - 1.0) * 0.5, 0.0, Dh - 1.0)
    x0 = jnp.floor(x); y0 = jnp.floor(y)
    wx = x - x0; wy = y - y0
    x0i = x0.astype(jnp.int32); y0i = y0.astype(jnp.int32)
    x1i = jnp.minimum(x0i + 1, Dw - 1); y1i = jnp.minimum(y0i + 1, Dh - 1)
    g = lambda yi, xi: tex[:, yi, xi]
    return (g(y0i, x0i) * (1 - wy) * (1 - wx) + g(y0i, x1i) * (1 - wy) * wx +
            g(y1i, x0i) * wy * (1 - wx) + g(y1i, x1i) * wy * wx)


def _forward_ref(uv_inputs, data, D):
    gx = uv_inputs[0, 0]
    gy = uv_inputs[0, 1]
    levels = []
    off, w = 0, D
    for _ in range(4):
        tex = data[0, :, off:off + w, :w]
        levels.append(_grid_sample_ref(tex, gx, gy))
        off += w
        w //= 2
    return sum(levels)[None]


if __name__ == "__main__":
    key = jax.random.PRNGKey(0)
    k_data, k_uv, k_uv2 = jax.random.split(key, 3)

    texture_dimensions = 16   # D (levels: 16, 8, 4, 2)
    texture_features = 8      # C
    H = W = 16

    # random_init=True semantics (zeros would make the test trivial)
    data = jax.random.normal(
        k_data, (1, texture_features, 2 * texture_dimensions, texture_dimensions),
        dtype=jnp.float32)
    uv_inputs = jax.random.uniform(
        k_uv, (1, 2, H, W), minval=-1.0, maxval=1.0, dtype=jnp.float32)

    # default (f32 matmul) path
    out = hierarchical_static_neural_texture(uv_inputs, data, texture_dimensions)
    out = jax.block_until_ready(out)
    ref = _forward_ref(uv_inputs, data, texture_dimensions)
    assert out.shape == (1, texture_features, H, W)
    assert jnp.allclose(out, ref, rtol=1e-4, atol=1e-4), (
        f"max abs err {jnp.max(jnp.abs(out - ref))}")

    # multi-tile grid (exercises remainder padding + the parallel pixel axis)
    H2 = W2 = 64
    uv2 = jax.random.uniform(
        k_uv2, (1, 2, H2, W2), minval=-1.0, maxval=1.0, dtype=jnp.float32)
    out2 = jax.block_until_ready(
        hierarchical_static_neural_texture(uv2, data, texture_dimensions, tile_n=1024))
    ref2 = _forward_ref(uv2, data, texture_dimensions)
    assert jnp.allclose(out2, ref2, rtol=1e-4, atol=1e-4), (
        f"max abs err {jnp.max(jnp.abs(out2 - ref2))}")

    # bf16 matmul-operand path (used automatically for large D to halve VMEM)
    out3 = jax.block_until_ready(
        hierarchical_static_neural_texture(
            uv_inputs, data, texture_dimensions, matmul_dtype=jnp.bfloat16))
    assert jnp.allclose(out3, ref, rtol=5e-2, atol=5e-2), (
        f"max abs err {jnp.max(jnp.abs(out3 - ref))}")

    print("KERNEL_OK")
</pallas_src>

<mosaic_0001>
module attributes {stable_mosaic.version = 11 : i64} {
  func.func @_hier_tex_kernel(%arg0: i32, %arg1: memref<2x128xf32, #tpu.memory_space<vmem>>, %arg2: memref<8x256xf32, #tpu.memory_space<vmem>>, %arg3: memref<8x64xf32, #tpu.memory_space<vmem>>, %arg4: memref<8x16xf32, #tpu.memory_space<vmem>>, %arg5: memref<8x8xf32, #tpu.memory_space<vmem>>, %arg6: memref<256x16xf32, #tpu.memory_space<vmem>>, %arg7: memref<64x8xf32, #tpu.memory_space<vmem>>, %arg8: memref<8x128xf32, #tpu.memory_space<vmem>>) attributes {dimension_semantics = [#tpu.dimension_semantics<parallel>], iteration_bounds = array<i64: 2>, scalar_prefetch = 0 : i64, scratch_operands = 0 : i64, tpu.core_type = #tpu.core_type<tc>, window_params = [{transform_indices = @transform_0, window_bounds = array<i64: 2, 128>}, {pipeline_mode = #tpu.pipeline_mode<synchronous>, transform_indices = @transform_1, window_bounds = array<i64: 8, 256>}, {pipeline_mode = #tpu.pipeline_mode<synchronous>, transform_indices = @transform_2, window_bounds = array<i64: 8, 64>}, {pipeline_mode = #tpu.pipeline_mode<synchronous>, transform_indices = @transform_3, window_bounds = array<i64: 8, 16>}, {pipeline_mode = #tpu.pipeline_mode<synchronous>, transform_indices = @transform_4, window_bounds = array<i64: 8, 8>}, {pipeline_mode = #tpu.pipeline_mode<synchronous>, transform_indices = @transform_5, window_bounds = array<i64: 256, 16>}, {pipeline_mode = #tpu.pipeline_mode<synchronous>, transform_indices = @transform_6, window_bounds = array<i64: 64, 8>}, {transform_indices = @transform_7, window_bounds = array<i64: 8, 128>}]} {
    %c0 = arith.constant 0 : index
    %c0_0 = arith.constant 0 : index
    %0 = vector.load %arg1[%c0, %c0_0] : memref<2x128xf32, #tpu.memory_space<vmem>>, vector<1x128xf32>
    %c1 = arith.constant 1 : index
    %c0_1 = arith.constant 0 : index
    %1 = vector.load %arg1[%c1, %c0_1] : memref<2x128xf32, #tpu.memory_space<vmem>>, vector<1x128xf32>
    %cst = arith.constant 1.000000e+00 : f32
    %2 = vector.broadcast %cst : f32 to vector<1x128xf32>
    %3 = arith.addf %0, %2 : vector<1x128xf32>
    %cst_2 = arith.constant 1.600000e+01 : f32
    %4 = vector.broadcast %cst_2 : f32 to vector<1x128xf32>
    %5 = arith.mulf %3, %4 : vector<1x128xf32>
    %cst_3 = arith.constant 1.000000e+00 : f32
    %6 = vector.broadcast %cst_3 : f32 to vector<1x128xf32>
    %7 = arith.subf %5, %6 : vector<1x128xf32>
    %cst_4 = arith.constant 5.000000e-01 : f32
    %8 = vector.broadcast %cst_4 : f32 to vector<1x128xf32>
    %9 = arith.mulf %7, %8 : vector<1x128xf32>
    %cst_5 = arith.constant 0.000000e+00 : f32
    %cst_6 = arith.constant 1.500000e+01 : f32
    %10 = vector.broadcast %cst_5 : f32 to vector<1x128xf32>
    %11 = arith.maximumf %10, %9 : vector<1x128xf32>
    %12 = vector.broadcast %cst_6 : f32 to vector<1x128xf32>
    %13 = arith.minimumf %12, %11 : vector<1x128xf32>
    %cst_7 = arith.constant 1.000000e+00 : f32
    %14 = vector.broadcast %cst_7 : f32 to vector<1x128xf32>
    %15 = arith.addf %1, %14 : vector<1x128xf32>
    %cst_8 = arith.constant 1.600000e+01 : f32
    %16 = vector.broadcast %cst_8 : f32 to vector<1x128xf32>
    %17 = arith.mulf %15, %16 : vector<1x128xf32>
    %cst_9 = arith.constant 1.000000e+00 : f32
    %18 = vector.broadcast %cst_9 : f32 to vector<1x128xf32>
    %19 = arith.subf %17, %18 : vector<1x128xf32>
    %cst_10 = arith.constant 5.000000e-01 : f32
    %20 = vector.broadcast %cst_10 : f32 to vector<1x128xf32>
    %21 = arith.mulf %19, %20 : vector<1x128xf32>
    %cst_11 = arith.constant 0.000000e+00 : f32
    %cst_12 = arith.constant 1.500000e+01 : f32
    %22 = vector.broadcast %cst_11 : f32 to vector<1x128xf32>
    %23 = arith.maximumf %22, %21 : vector<1x128xf32>
    %24 = vector.broadcast %cst_12 : f32 to vector<1x128xf32>
    %25 = arith.minimumf %24, %23 : vector<1x128xf32>
    %26 = tpu.iota {dimensions = array<i32: 0>} : vector<16x1xi32>
    %27 = arith.sitofp %26 : vector<16x1xi32> to vector<16x1xf32>
    %28 = vector.broadcast %27 : vector<16x1xf32> to vector<16x128xf32>
    %29 = vector.broadcast %13 : vector<1x128xf32> to vector<16x128xf32>
    %30 = arith.subf %28, %29 : vector<16x128xf32>
    %31 = math.absf %30 : vector<16x128xf32>
    %cst_13 = arith.constant 1.000000e+00 : f32
    %32 = vector.broadcast %cst_13 : f32 to vector<16x128xf32>
    %33 = arith.subf %32, %31 : vector<16x128xf32>
    %cst_14 = arith.constant 0.000000e+00 : f32
    %34 = vector.broadcast %cst_14 : f32 to vector<16x128xf32>
    %35 = arith.maximumf %34, %33 : vector<16x128xf32>
    %36 = vector.broadcast %27 : vector<16x1xf32> to vector<16x128xf32>
    %37 = vector.broadcast %25 : vector<1x128xf32> to vector<16x128xf32>
    %38 = arith.subf %36, %37 : vector<16x128xf32>
    %39 = math.absf %38 : vector<16x128xf32>
    %cst_15 = arith.constant 1.000000e+00 : f32
    %40 = vector.broadcast %cst_15 : f32 to vector<16x128xf32>
    %41 = arith.subf %40, %39 : vector<16x128xf32>
    %cst_16 = arith.constant 0.000000e+00 : f32
    %42 = vector.broadcast %cst_16 : f32 to vector<16x128xf32>
    %43 = arith.maximumf %42, %41 : vector<16x128xf32>
    %c0_17 = arith.constant 0 : index
    %c0_18 = arith.constant 0 : index
    %44 = vector.load %arg6[%c0_17, %c0_18] : memref<256x16xf32, #tpu.memory_space<vmem>>, vector<256x16xf32>
    %cst_19 = arith.constant dense<0.000000e+00> : vector<256x128xf32>
    %45 = tpu.matmul %44, %43, %cst_19 {dimension_numbers = #tpu.dot_dimension_numbers<[1], [0], [0], [1], [0, 0, 1, 1], [], []>} : vector<256x16xf32>, vector<16x128xf32>, vector<256x128xf32> -> vector<256x128xf32>
    %46 = tpu.concatenate %35, %35, %35, %35, %35, %35, %35, %35, %35, %35, %35, %35, %35, %35, %35, %35 in 0 : vector<16x128xf32>, vector<16x128xf32>, vector<16x128xf32>, vector<16x128xf32>, vector<16x128xf32>, vector<16x128xf32>, vector<16x128xf32>, vector<16x128xf32>, vector<16x128xf32>, vector<16x128xf32>, vector<16x128xf32>, vector<16x128xf32>, vector<16x128xf32>, vector<16x128xf32>, vector<16x128xf32>, vector<16x128xf32> -> vector<256x128xf32>
    %47 = arith.mulf %45, %46 : vector<256x128xf32>
    %c0_20 = arith.constant 0 : index
    %c0_21 = arith.constant 0 : index
    %48 = vector.load %arg2[%c0_20, %c0_21] : memref<8x256xf32, #tpu.memory_space<vmem>>, vector<8x256xf32>
    %cst_22 = arith.constant dense<0.000000e+00> : vector<8x128xf32>
    %49 = tpu.matmul %48, %47, %cst_22 {dimension_numbers = #tpu.dot_dimension_numbers<[1], [0], [0], [1], [0, 0, 1, 1], [], []>} : vector<8x256xf32>, vector<256x128xf32>, vector<8x128xf32> -> vector<8x128xf32>
    %cst_23 = arith.constant 1.000000e+00 : f32
    %50 = vector.broadcast %cst_23 : f32 to vector<1x128xf32>
    %51 = arith.addf %0, %50 : vector<1x128xf32>
    %cst_24 = arith.constant 8.000000e+00 : f32
    %52 = vector.broadcast %cst_24 : f32 to vector<1x128xf32>
    %53 = arith.mulf %51, %52 : vector<1x128xf32>
    %cst_25 = arith.constant 1.000000e+00 : f32
    %54 = vector.broadcast %cst_25 : f32 to vector<1x128xf32>
    %55 = arith.subf %53, %54 : vector<1x128xf32>
    %cst_26 = arith.constant 5.000000e-01 : f32
    %56 = vector.broadcast %cst_26 : f32 to vector<1x128xf32>
    %57 = arith.mulf %55, %56 : vector<1x128xf32>
    %cst_27 = arith.constant 0.000000e+00 : f32
    %cst_28 = arith.constant 7.000000e+00 : f32
    %58 = vector.broadcast %cst_27 : f32 to vector<1x128xf32>
    %59 = arith.maximumf %58, %57 : vector<1x128xf32>
    %60 = vector.broadcast %cst_28 : f32 to vector<1x128xf32>
    %61 = arith.minimumf %60, %59 : vector<1x128xf32>
    %cst_29 = arith.constant 1.000000e+00 : f32
    %62 = vector.broadcast %cst_29 : f32 to vector<1x128xf32>
    %63 = arith.addf %1, %62 : vector<1x128xf32>
    %cst_30 = arith.constant 8.000000e+00 : f32
    %64 = vector.broadcast %cst_30 : f32 to vector<1x128xf32>
    %65 = arith.mulf %63, %64 : vector<1x128xf32>
    %cst_31 = arith.constant 1.000000e+00 : f32
    %66 = vector.broadcast %cst_31 : f32 to vector<1x128xf32>
    %67 = arith.subf %65, %66 : vector<1x128xf32>
    %cst_32 = arith.constant 5.000000e-01 : f32
    %68 = vector.broadcast %cst_32 : f32 to vector<1x128xf32>
    %69 = arith.mulf %67, %68 : vector<1x128xf32>
    %cst_33 = arith.constant 0.000000e+00 : f32
    %cst_34 = arith.constant 7.000000e+00 : f32
    %70 = vector.broadcast %cst_33 : f32 to vector<1x128xf32>
    %71 = arith.maximumf %70, %69 : vector<1x128xf32>
    %72 = vector.broadcast %cst_34 : f32 to vector<1x128xf32>
    %73 = arith.minimumf %72, %71 : vector<1x128xf32>
    %74 = tpu.iota {dimensions = array<i32: 0>} : vector<8x1xi32>
    %75 = arith.sitofp %74 : vector<8x1xi32> to vector<8x1xf32>
    %76 = vector.broadcast %75 : vector<8x1xf32> to vector<8x128xf32>
    %77 = vector.broadcast %61 : vector<1x128xf32> to vector<8x128xf32>
    %78 = arith.subf %76, %77 : vector<8x128xf32>
    %79 = math.absf %78 : vector<8x128xf32>
    %cst_35 = arith.constant 1.000000e+00 : f32
    %80 = vector.broadcast %cst_35 : f32 to vector<8x128xf32>
    %81 = arith.subf %80, %79 : vector<8x128xf32>
    %cst_36 = arith.constant 0.000000e+00 : f32
    %82 = vector.broadcast %cst_36 : f32 to vector<8x128xf32>
    %83 = arith.maximumf %82, %81 : vector<8x128xf32>
    %84 = vector.broadcast %75 : vector<8x1xf32> to vector<8x128xf32>
    %85 = vector.broadcast %73 : vector<1x128xf32> to vector<8x128xf32>
    %86 = arith.subf %84, %85 : vector<8x128xf32>
    %87 = math.absf %86 : vector<8x128xf32>
    %cst_37 = arith.constant 1.000000e+00 : f32
    %88 = vector.broadcast %cst_37 : f32 to vector<8x128xf32>
    %89 = arith.subf %88, %87 : vector<8x128xf32>
    %cst_38 = arith.constant 0.000000e+00 : f32
    %90 = vector.broadcast %cst_38 : f32 to vector<8x128xf32>
    %91 = arith.maximumf %90, %89 : vector<8x128xf32>
    %c0_39 = arith.constant 0 : index
    %c0_40 = arith.constant 0 : index
    %92 = vector.load %arg7[%c0_39, %c0_40] : memref<64x8xf32, #tpu.memory_space<vmem>>, vector<64x8xf32>
    %cst_41 = arith.constant dense<0.000000e+00> : vector<64x128xf32>
    %93 = tpu.matmul %92, %91, %cst_41 {dimension_numbers = #tpu.dot_dimension_numbers<[1], [0], [0], [1], [0, 0, 1, 1], [], []>} : vector<64x8xf32>, vector<8x128xf32>, vector<64x128xf32> -> vector<64x128xf32>
    %94 = tpu.concatenate %83, %83, %83, %83, %83, %83, %83, %83 in 0 : vector<8x128xf32>, vector<8x128xf32>, vector<8x128xf32>, vector<8x128xf32>, vector<8x128xf32>, vector<8x128xf32>, vector<8x128xf32>, vector<8x128xf32> -> vector<64x128xf32>
    %95 = arith.mulf %93, %94 : vector<64x128xf32>
    %c0_42 = arith.constant 0 : index
    %c0_43 = arith.constant 0 : index
    %96 = vector.load %arg3[%c0_42, %c0_43] : memref<8x64xf32, #tpu.memory_space<vmem>>, vector<8x64xf32>
    %cst_44 = arith.constant dense<0.000000e+00> : vector<8x128xf32>
    %97 = tpu.matmul %96, %95, %cst_44 {dimension_numbers = #tpu.dot_dimension_numbers<[1], [0], [0], [1], [0, 0, 1, 1], [], []>} : vector<8x64xf32>, vector<64x128xf32>, vector<8x128xf32> -> vector<8x128xf32>
    %98 = arith.addf %49, %97 : vector<8x128xf32>
    %cst_45 = arith.constant 1.000000e+00 : f32
    %99 = vector.broadcast %cst_45 : f32 to vector<1x128xf32>
    %100 = arith.addf %0, %99 : vector<1x128xf32>
    %cst_46 = arith.constant 4.000000e+00 : f32
    %101 = vector.broadcast %cst_46 : f32 to vector<1x128xf32>
    %102 = arith.mulf %100, %101 : vector<1x128xf32>
    %cst_47 = arith.constant 1.000000e+00 : f32
    %103 = vector.broadcast %cst_47 : f32 to vector<1x128xf32>
    %104 = arith.subf %102, %103 : vector<1x128xf32>
    %cst_48 = arith.constant 5.000000e-01 : f32
    %105 = vector.broadcast %cst_48 : f32 to vector<1x128xf32>
    %106 = arith.mulf %104, %105 : vector<1x128xf32>
    %cst_49 = arith.constant 0.000000e+00 : f32
    %cst_50 = arith.constant 3.000000e+00 : f32
    %107 = vector.broadcast %cst_49 : f32 to vector<1x128xf32>
    %108 = arith.maximumf %107, %106 : vector<1x128xf32>
    %109 = vector.broadcast %cst_50 : f32 to vector<1x128xf32>
    %110 = arith.minimumf %109, %108 : vector<1x128xf32>
    %cst_51 = arith.constant 1.000000e+00 : f32
    %111 = vector.broadcast %cst_51 : f32 to vector<1x128xf32>
    %112 = arith.addf %1, %111 : vector<1x128xf32>
    %cst_52 = arith.constant 4.000000e+00 : f32
    %113 = vector.broadcast %cst_52 : f32 to vector<1x128xf32>
    %114 = arith.mulf %112, %113 : vector<1x128xf32>
    %cst_53 = arith.constant 1.000000e+00 : f32
    %115 = vector.broadcast %cst_53 : f32 to vector<1x128xf32>
    %116 = arith.subf %114, %115 : vector<1x128xf32>
    %cst_54 = arith.constant 5.000000e-01 : f32
    %117 = vector.broadcast %cst_54 : f32 to vector<1x128xf32>
    %118 = arith.mulf %116, %117 : vector<1x128xf32>
    %cst_55 = arith.constant 0.000000e+00 : f32
    %cst_56 = arith.constant 3.000000e+00 : f32
    %119 = vector.broadcast %cst_55 : f32 to vector<1x128xf32>
    %120 = arith.maximumf %119, %118 : vector<1x128xf32>
    %121 = vector.broadcast %cst_56 : f32 to vector<1x128xf32>
    %122 = arith.minimumf %121, %120 : vector<1x128xf32>
    %123 = tpu.iota {dimensions = array<i32: 0>} : vector<16x1xi32>
    %c2_i32 = arith.constant 2 : i32
    %124 = vector.broadcast %c2_i32 : i32 to vector<16x1xi32>
    %125 = arith.shrsi %123, %124 : vector<16x1xi32>
    %126 = arith.sitofp %125 : vector<16x1xi32> to vector<16x1xf32>
    %c3_i32 = arith.constant 3 : i32
    %127 = vector.broadcast %c3_i32 : i32 to vector<16x1xi32>
    %128 = arith.andi %123, %127 : vector<16x1xi32>
    %129 = arith.sitofp %128 : vector<16x1xi32> to vector<16x1xf32>
    %130 = vector.broadcast %126 : vector<16x1xf32> to vector<16x128xf32>
    %131 = vector.broadcast %122 : vector<1x128xf32> to vector<16x128xf32>
    %132 = arith.subf %130, %131 : vector<16x128xf32>
    %133 = math.absf %132 : vector<16x128xf32>
    %cst_57 = arith.constant 1.000000e+00 : f32
    %134 = vector.broadcast %cst_57 : f32 to vector<16x128xf32>
    %135 = arith.subf %134, %133 : vector<16x128xf32>
    %cst_58 = arith.constant 0.000000e+00 : f32
    %136 = vector.broadcast %cst_58 : f32 to vector<16x128xf32>
    %137 = arith.maximumf %136, %135 : vector<16x128xf32>
    %138 = vector.broadcast %129 : vector<16x1xf32> to vector<16x128xf32>
    %139 = vector.broadcast %110 : vector<1x128xf32> to vector<16x128xf32>
    %140 = arith.subf %138, %139 : vector<16x128xf32>
    %141 = math.absf %140 : vector<16x128xf32>
    %cst_59 = arith.constant 1.000000e+00 : f32
    %142 = vector.broadcast %cst_59 : f32 to vector<16x128xf32>
    %143 = arith.subf %142, %141 : vector<16x128xf32>
    %cst_60 = arith.constant 0.000000e+00 : f32
    %144 = vector.broadcast %cst_60 : f32 to vector<16x128xf32>
    %145 = arith.maximumf %144, %143 : vector<16x128xf32>
    %146 = arith.mulf %137, %145 : vector<16x128xf32>
    %c0_61 = arith.constant 0 : index
    %c0_62 = arith.constant 0 : index
    %147 = vector.load %arg4[%c0_61, %c0_62] : memref<8x16xf32, #tpu.memory_space<vmem>>, vector<8x16xf32>
    %cst_63 = arith.constant dense<0.000000e+00> : vector<8x128xf32>
    %148 = tpu.matmul %147, %146, %cst_63 {dimension_numbers = #tpu.dot_dimension_numbers<[1], [0], [0], [1], [0, 0, 1, 1], [], []>} : vector<8x16xf32>, vector<16x128xf32>, vector<8x128xf32> -> vector<8x128xf32>
    %149 = arith.addf %98, %148 : vector<8x128xf32>
    %cst_64 = arith.constant 1.000000e+00 : f32
    %150 = vector.broadcast %cst_64 : f32 to vector<1x128xf32>
    %151 = arith.addf %0, %150 : vector<1x128xf32>
    %cst_65 = arith.constant 2.000000e+00 : f32
    %152 = vector.broadcast %cst_65 : f32 to vector<1x128xf32>
    %153 = arith.mulf %151, %152 : vector<1x128xf32>
    %cst_66 = arith.constant 1.000000e+00 : f32
    %154 = vector.broadcast %cst_66 : f32 to vector<1x128xf32>
    %155 = arith.subf %153, %154 : vector<1x128xf32>
    %cst_67 = arith.constant 5.000000e-01 : f32
    %156 = vector.broadcast %cst_67 : f32 to vector<1x128xf32>
    %157 = arith.mulf %155, %156 : vector<1x128xf32>
    %cst_68 = arith.constant 0.000000e+00 : f32
    %cst_69 = arith.constant 1.000000e+00 : f32
    %158 = vector.broadcast %cst_68 : f32 to vector<1x128xf32>
    %159 = arith.maximumf %158, %157 : vector<1x128xf32>
    %160 = vector.broadcast %cst_69 : f32 to vector<1x128xf32>
    %161 = arith.minimumf %160, %159 : vector<1x128xf32>
    %cst_70 = arith.constant 1.000000e+00 : f32
    %162 = vector.broadcast %cst_70 : f32 to vector<1x128xf32>
    %163 = arith.addf %1, %162 : vector<1x128xf32>
    %cst_71 = arith.constant 2.000000e+00 : f32
    %164 = vector.broadcast %cst_71 : f32 to vector<1x128xf32>
    %165 = arith.mulf %163, %164 : vector<1x128xf32>
    %cst_72 = arith.constant 1.000000e+00 : f32
    %166 = vector.broadcast %cst_72 : f32 to vector<1x128xf32>
    %167 = arith.subf %165, %166 : vector<1x128xf32>
    %cst_73 = arith.constant 5.000000e-01 : f32
    %168 = vector.broadcast %cst_73 : f32 to vector<1x128xf32>
    %169 = arith.mulf %167, %168 : vector<1x128xf32>
    %cst_74 = arith.constant 0.000000e+00 : f32
    %cst_75 = arith.constant 1.000000e+00 : f32
    %170 = vector.broadcast %cst_74 : f32 to vector<1x128xf32>
    %171 = arith.maximumf %170, %169 : vector<1x128xf32>
    %172 = vector.broadcast %cst_75 : f32 to vector<1x128xf32>
    %173 = arith.minimumf %172, %171 : vector<1x128xf32>
    %174 = tpu.iota {dimensions = array<i32: 0>} : vector<8x1xi32>
    %c1_i32 = arith.constant 1 : i32
    %175 = vector.broadcast %c1_i32 : i32 to vector<8x1xi32>
    %176 = arith.shrsi %174, %175 : vector<8x1xi32>
    %177 = arith.sitofp %176 : vector<8x1xi32> to vector<8x1xf32>
    %c1_i32_76 = arith.constant 1 : i32
    %178 = vector.broadcast %c1_i32_76 : i32 to vector<8x1xi32>
    %179 = arith.andi %174, %178 : vector<8x1xi32>
    %180 = arith.sitofp %179 : vector<8x1xi32> to vector<8x1xf32>
    %181 = vector.broadcast %177 : vector<8x1xf32> to vector<8x128xf32>
    %182 = vector.broadcast %173 : vector<1x128xf32> to vector<8x128xf32>
    %183 = arith.subf %181, %182 : vector<8x128xf32>
    %184 = math.absf %183 : vector<8x128xf32>
    %cst_77 = arith.constant 1.000000e+00 : f32
    %185 = vector.broadcast %cst_77 : f32 to vector<8x128xf32>
    %186 = arith.subf %185, %184 : vector<8x128xf32>
    %cst_78 = arith.constant 0.000000e+00 : f32
    %187 = vector.broadcast %cst_78 : f32 to vector<8x128xf32>
    %188 = arith.maximumf %187, %186 : vector<8x128xf32>
    %189 = vector.broadcast %180 : vector<8x1xf32> to vector<8x128xf32>
    %190 = vector.broadcast %161 : vector<1x128xf32> to vector<8x128xf32>
    %191 = arith.subf %189, %190 : vector<8x128xf32>
    %192 = math.absf %191 : vector<8x128xf32>
    %cst_79 = arith.constant 1.000000e+00 : f32
    %193 = vector.broadcast %cst_79 : f32 to vector<8x128xf32>
    %194 = arith.subf %193, %192 : vector<8x128xf32>
    %cst_80 = arith.constant 0.000000e+00 : f32
    %195 = vector.broadcast %cst_80 : f32 to vector<8x128xf32>
    %196 = arith.maximumf %195, %194 : vector<8x128xf32>
    %197 = arith.mulf %188, %196 : vector<8x128xf32>
    %c0_81 = arith.constant 0 : index
    %c0_82 = arith.constant 0 : index
    %198 = vector.load %arg5[%c0_81, %c0_82] : memref<8x8xf32, #tpu.memory_space<vmem>>, vector<8x8xf32>
    %cst_83 = arith.constant dense<0.000000e+00> : vector<8x128xf32>
    %199 = tpu.matmul %198, %197, %cst_83 {dimension_numbers = #tpu.dot_dimension_numbers<[1], [0], [0], [1], [0, 0, 1, 1], [], []>} : vector<8x8xf32>, vector<8x128xf32>, vector<8x128xf32> -> vector<8x128xf32>
    %200 = arith.addf %149, %199 : vector<8x128xf32>
    %c0_84 = arith.constant 0 : index
    %c0_85 = arith.constant 0 : index
    %201 = vector.load %arg8[%c0_84, %c0_85] : memref<8x128xf32, #tpu.memory_space<vmem>>, vector<8x128xf32>
    tpu.vector_store %arg8[%c0_84, %c0_85], %200 {strides = array<i32>} : memref<8x128xf32, #tpu.memory_space<vmem>>, vector<8x128xf32>,
    return
  }
  func.func @transform_0(%arg0: i32) -> (i32, i32) {
    %c0_i32 = arith.constant 0 : i32
    %c0_i32_0 = arith.constant 0 : i32
    return %c0_i32, %arg0 : i32, i32
  }
  func.func @transform_1(%arg0: i32) -> (i32, i32) {
    %c0_i32 = arith.constant 0 : i32
    %c0_i32_0 = arith.constant 0 : i32
    %c0_i32_1 = arith.constant 0 : i32
    return %c0_i32, %c0_i32_0 : i32, i32
  }
  func.func @transform_2(%arg0: i32) -> (i32, i32) {
    %c0_i32 = arith.constant 0 : i32
    %c0_i32_0 = arith.constant 0 : i32
    %c0_i32_1 = arith.constant 0 : i32
    return %c0_i32, %c0_i32_0 : i32, i32
  }
  func.func @transform_3(%arg0: i32) -> (i32, i32) {
    %c0_i32 = arith.constant 0 : i32
    %c0_i32_0 = arith.constant 0 : i32
    %c0_i32_1 = arith.constant 0 : i32
    return %c0_i32, %c0_i32_0 : i32, i32
  }
  func.func @transform_4(%arg0: i32) -> (i32, i32) {
    %c0_i32 = arith.constant 0 : i32
    %c0_i32_0 = arith.constant 0 : i32
    %c0_i32_1 = arith.constant 0 : i32
    return %c0_i32, %c0_i32_0 : i32, i32
  }
  func.func @transform_5(%arg0: i32) -> (i32, i32) {
    %c0_i32 = arith.constant 0 : i32
    %c0_i32_0 = arith.constant 0 : i32
    %c0_i32_1 = arith.constant 0 : i32
    return %c0_i32, %c0_i32_0 : i32, i32
  }
  func.func @transform_6(%arg0: i32) -> (i32, i32) {
    %c0_i32 = arith.constant 0 : i32
    %c0_i32_0 = arith.constant 0 : i32
    %c0_i32_1 = arith.constant 0 : i32
    return %c0_i32, %c0_i32_0 : i32, i32
  }
  func.func @transform_7(%arg0: i32) -> (i32, i32) {
    %c0_i32 = arith.constant 0 : i32
    %c0_i32_0 = arith.constant 0 : i32
    return %c0_i32, %arg0 : i32, i32
  }
}

</mosaic_0001>

<bundles_post_ra>
// kernel: tpu_custom_call.1
= control target key start
LH: loop header
LB: loop body
LE: loop exit
PB: predicated region body
PF: predicated region fallthrough
CT: control target
= control target key end

     0   :  { %12 = vsyncpa [#allocation3], 0  ;;  %s2153_s0 = inlined_call_operand.vmem [shape: f32[2,256], index: 0, kind: input, shape index: {}]   ;;  %s2154_s1 = inlined_call_operand.vmem [shape: f32[8,256], index: 1, kind: input, shape index: {}]   ;;  %s2155_s2 = inlined_call_operand.vmem [shape: f32[8,64], index: 2, kind: input, shape index: {}]   ;;  %s2156_s3 = inlined_call_operand.vmem [shape: f32[8,16], index: 3, kind: input, shape index: {}]   ;;  %s2157_s4 = inlined_call_operand.vmem [shape: f32[8,8], index: 4, kind: input, shape index: {}]   ;;  %s2158_s5 = inlined_call_operand.vmem [shape: f32[256,16], index: 5, kind: input, shape index: {}]   ;;  %s2159_s6 = inlined_call_operand.vmem [shape: f32[64,8], index: 6, kind: input, shape index: {}]   ;;  %s2160_s7 = inlined_call_operand.hbm [shape: f32[8,256], index: 7, kind: output, shape index: {}]  }
   0x1   :  { %14 = vsyncpa [#allocation3 + $0x1], 0  ;;  %s1717_s24 = smov 0   ;;  %s1719_s25 = smov 0  }
   0x2   :  { %s1721_s26 = smov 0   ;;  %s1723_s27 = smov 0  }
   0x3 LB: > { %s1738_s28 = sadd.s32 4294967295, %s1672_s27   ;;  %s1321_s29 = sadd.s32 4294967294, %s1672_s27   ;;  %s1672_s27 = sphi %s1723_s27, %s2166_s27   ;;  %s1668_s26 = sphi %s1721_s26, %s2165_s26   ;;  %s1664_s25 = sphi %s1719_s25, %s2164_s25   ;;  %s1660_s24 = sphi %s1717_s24, %s2163_s24  }
   0x4   : > { %s1742_s30 = sadd.s32 1, %s1672_s27   ;;  %s179_s8 = sadd.s32 1, %s1668_s26 }
   0x5   : > { %s176_s9 = ssub.s32 %s1672_s27, %s1742_s30  ;;  %p189_p0 = scmp.ne.s32.totalorder %s1668_s26, %s1664_s25 }
   0x6   : > { %p177_p1 = scmp.eq.s32.totalorder %s176_s9, 0  ;;  %p190_p2 = scmp.eq.s32.totalorder %s1738_s28, 1 }
   0x7   : > { %p195_p3 = scmp.ne.s32.totalorder %s1664_s25, %s1660_s24  ;;  %p196_p4 = scmp.eq.s32.totalorder %s1321_s29, 1 }
   0x8   : > { %s1753_s10 = scalar_select %p177_p1, %s1668_s26, %s179_s8  }
   0x9   : > { %p1755_p5 = por %p190_p2, %p189_p0  ;;  %p1759_p6 = por %p196_p4, %p195_p3 }
   0xa   : > { %p1324_p7 = scmp.ge.s32.totalorder %s1672_s27, 1  ;;  %p239_p8 = scmp.lt.s32.totalorder %s1672_s27, 3 }
   0xc   : > { %p240_p9 = pnand %p1324_p7, %p239_p8 }
   0xd   : > { %p270_p10 = scmp.lt.s32.totalorder (!%p240_p9), %s1738_s28, 1  ;;  %s267_s15 = sand.u32 (!%p240_p9), 1, %s1664_s25  }
   0xe   : > { %243 = sbr.rel (%p240_p9) target bundleno = 553 (0x229), region = 48  ;;  %s1325_s16 = sshll.u32 (!%p240_p9), %s267_s15, 3 }
   0xf   : > { %s1249_s23 = scalar_lea.sflag (!%p240_p9), [#allocation3], %s267_s15 }
  0x13   : > { %v317_v0 = vld [vmem:[%s2158_s5] sm:$0xff]  ;;  %vm349_vm0 = vcmask 130048   ;;  %vm739_vm1 = vcmask 64512   ;;  %s271_s17 = scalar_select %p270_p10, %s1738_s28, 1  ;;  %v288_v2 = vlaneseq  ;;  %v732_v34 = vld [vmem:[%s2159_s6 + $0x8] sm:$0xff]  ;;  %v733_v36 = vld [vmem:[%s2159_s6 + $0x10] sm:$0xff] }
  0x14   : > { %1478 = vmatprep.mubr.msk.f32.mxu0 %vm349_vm0, %v317_v0  ;;  %v731_v1 = vld [vmem:[%s2159_s6] sm:$0xff]  ;;  %v318_v35 = vld [vmem:[%s2158_s5 + $0x8] sm:$0xff]  ;;  %v319_v37 = vld [vmem:[%s2158_s5 + $0x10] sm:$0xff]  ;;  %vm1675_vm2 = vmmov 0   ;;  %vm878_vm3 = vcmask 523264  }
  0x15   : > { %1528 = vmatprep.mubr.msk.f32.mxu1 %vm739_vm1, %v731_v1  ;;  %s1326_s18 = sshll.u32 %s271_s17, 1  ;;  %v1784_v6 = vshrl.u32 %v288_v2, 7  ;;  %v734_v38 = vld [vmem:[%s2159_s6 + $0x18] sm:$0xff]  ;;  %v735_v40 = vld [vmem:[%s2159_s6 + $0x20] sm:$0xff]  ;;  %v736_v42 = vld [vmem:[%s2159_s6 + $0x28] sm:$0xff]  ;;  %s1379_s17 = sshll.u32 %s1738_s28, 7 }
  0x16   : > { %s1778_s21 = scalar_lea.vmem %s2153_s0, %s1326_s18  ;;  %v320_v39 = vld [vmem:[%s2158_s5 + $0x18] sm:$0xff]  ;;  %v321_v41 = vld [vmem:[%s2158_s5 + $0x20] sm:$0xff]  ;;  %v322_v43 = vld [vmem:[%s2158_s5 + $0x28] sm:$0xff]  ;;  %s269_s18 = scalar_lea.vmem [#allocation2], %s1325_s16 }
  0x17   : > { %v275_v3 = vld [vmem:[%s1778_s21 + $0x1] sm:$0x1]  ;;  %v1788_v11 = vadd.s32 8, %v1784_v6  ;;  %v1791_v14 = vsub.s32 0, %v1784_v6  ;;  %v1795_v18 = vcvt.s32.f32 %v1784_v6  ;;  %v737_v44 = vld [vmem:[%s2159_s6 + $0x30] sm:$0xff]  ;;  %v738_v46 = vld [vmem:[%s2159_s6 + $0x38] sm:$0xff]  ;;  %s2118_s22 = scalar_lea.hbm %s2160_s7, %s1379_s17 }
  0x18   : > { %v1781_v4 = vadd.f32 1.0, %v275_v3  ;;  %v323_v45 = vld [vmem:[%s2158_s5 + $0x30] sm:$0xff]  ;;  %v324_v47 = vld [vmem:[%s2158_s5 + $0x38] sm:$0xff]  ;;  %v325_v48 = vld [vmem:[%s2158_s5 + $0x40] sm:$0xff]  ;;  %s1676_s28 = smov [#allocation2]  }
  0x19   : > { %v292_v17 = vcvt.s32.f32 %v1788_v11  ;;  %v326_v49 = vld [vmem:[%s2158_s5 + $0x48] sm:$0xff]  ;;  %v327_v50 = vld [vmem:[%s2158_s5 + $0x50] sm:$0xff]  ;;  %v328_v51 = vld [vmem:[%s2158_s5 + $0x58] sm:$0xff]  ;;  %s1616_s8 = sshll.u32 %s1676_s28, 4  ;;  %s1617_s8 = int_to_ptr.vmem [resolvable:$false] %s1616_s8 }
  0x1a   : > { %v283_v5 = vmul.f32 16.0, %v1781_v4  ;;  %v710_v7 = vmul.f32 8.0, %v1781_v4  ;;  %v329_v52 = vld [vmem:[%s2158_s5 + $0x60] sm:$0xff]  ;;  %v330_v53 = vld [vmem:[%s2158_s5 + $0x68] sm:$0xff]  ;;  %v331_v54 = vld [vmem:[%s2158_s5 + $0x70] sm:$0xff]  ;;  %s1618_s9 = scalar_lea.vmem %s1617_s8, 256 }
  0x1b   : > { %v332_v55 = vld [vmem:[%s2158_s5 + $0x78] sm:$0xff]  ;;  %v333_v56 = vld [vmem:[%s2158_s5 + $0x80] sm:$0xff]  ;;  %v334_v57 = vld [vmem:[%s2158_s5 + $0x88] sm:$0xff] }
  0x1c   : > { %v1328_v8 = vadd.f32 -1.0, %v283_v5  ;;  %v1362_v9 = vadd.f32 -1.0, %v710_v7  ;;  %v335_v58 = vld [vmem:[%s2158_s5 + $0x90] sm:$0xff]  ;;  %v336_v59 = vld [vmem:[%s2158_s5 + $0x98] sm:$0xff]  ;;  %v337_v60 = vld [vmem:[%s2158_s5 + $0xa0] sm:$0xff] }
  0x1d   : > { %v338_v61 = vld [vmem:[%s2158_s5 + $0xa8] sm:$0xff]  ;;  %v339_v62 = vld [vmem:[%s2158_s5 + $0xb0] sm:$0xff]  ;;  %v340_v63 = vld [vmem:[%s2158_s5 + $0xb8] sm:$0xff] }
  0x1e   : > { %v285_v10 = vmul.f32 0.5, %v1328_v8  ;;  %v712_v12 = vmul.f32 0.5, %v1362_v9  ;;  %v341_v0 = vld [vmem:[%s2158_s5 + $0xc0] sm:$0xff]  ;;  %v342_v1 = vld [vmem:[%s2158_s5 + $0xc8] sm:$0xff]  ;;  %v343_v2 = vld [vmem:[%s2158_s5 + $0xd0] sm:$0xff] }
  0x1f   : > { %v344_v3 = vld [vmem:[%s2158_s5 + $0xd8] sm:$0xff]  ;;  %v345_v5 = vld [vmem:[%s2158_s5 + $0xe0] sm:$0xff]  ;;  %v346_v7 = vld [vmem:[%s2158_s5 + $0xe8] sm:$0xff] }
  0x20   : > { %v286_v13 = vmax.f32 %v285_v10, 0.0  ;;  %v713_v15 = vmax.f32 %v712_v12, 0.0  ;;  %v347_v8 = vld [vmem:[%s2158_s5 + $0xf0] sm:$0xff]  ;;  %v348_v9 = vld [vmem:[%s2158_s5 + $0xf8] sm:$0xff]  ;;  %v1674_v10 = vmov 0.0  }
  0x21   : > { %v274_v12 = vld [vmem:[%s1778_s21] sm:$0x1]  ;;  %s1262_s21 = sshll.u32 %s269_s18, 4  ;;  %s1263_s21 = int_to_ptr.vmem [resolvable:$true] %s1262_s21 }
  0x22   : > { %v287_v16 = vmin.f32 %v286_v13, 15.0  ;;  %v714_v19 = vmin.f32 %v713_v15, 7.0  ;;  %v1959_v13 = vadd.f32 1.0, %v274_v12  ;;  %s1612_s29 = scalar_lea.vmem %s1263_s21, 128  ;;  %p1619_p0 = scmp.lt.s32.totalorder %s1263_s21, %s1617_s8 }
  0x23   : > { %p1613_p11 = scmp.ne.s32.totalorder %s1263_s21, %s1612_s29  ;;  %p1620_p1 = scmp.lt.s32.totalorder %s1618_s9, %s1612_s29 }
  0x24   : > { %v308_v20 = vrot.slane %v287_v16, %v1791_v14  ;;  %v726_v21 = vrot.slane %v714_v19, %v1791_v14  ;;  %v277_v15 = vmul.f32 16.0, %v1959_v13 }
  0x25   : > { %p1614_p12 = pnand %p1613_p11, %p1755_p5  ;;  %p1621_p2 = por %p1620_p1, %p1619_p0 }
  0x26   : > { %v310_v22 = vsub.f32 %v292_v17, %v308_v20  ;;  %v309_v23 = vsub.f32 %v1795_v18, %v308_v20  ;;  %v727_v24 = vsub.f32 %v1795_v18, %v726_v21  ;;  %v1327_v16 = vadd.f32 -1.0, %v277_v15 }
  0x27   : > { %v705_v20 = vmul.f32 8.0, %v1959_v13  ;;  %p1615_p13 = pneg %p1614_p12 }
  0x28   : > { %v312_v25 = vand.u32 2147483647, %v310_v22  ;;  %v311_v26 = vand.u32 2147483647, %v309_v23  ;;  %v728_v27 = vand.u32 2147483647, %v727_v24 }
  0x29   : > { %v279_v19 = vmul.f32 0.5, %v1327_v16  ;;  %v1361_v22 = vadd.f32 -1.0, %v705_v20  ;;  %p1622_p3 = pnand %p1621_p2, %p1615_p13 }
  0x2a   : > { %v314_v28 = vsub.f32 1.0, %v312_v25  ;;  %v313_v29 = vsub.f32 1.0, %v311_v26  ;;  %v729_v30 = vsub.f32 1.0, %v728_v27 }
  0x2b   : > { %v280_v21 = vmax.f32 %v279_v19, 0.0  ;;  %v707_v24 = vmul.f32 0.5, %v1361_v22  ;;  %v704_v22 = vld [vmem:[%s2154_s1 + $0x8] sm:$0xff] }
  0x2c   : > { %v316_v31 = vmax.f32 %v314_v28, 0.0  ;;  %v315_v32 = vmax.f32 %v313_v29, 0.0  ;;  %v730_v33 = vmax.f32 %v729_v30, 0.0 }
  0x2d   : > { %v281_v23 = vmin.f32 %v280_v21, 15.0  ;;  %v708_v26 = vmax.f32 %v707_v24, 0.0  ;;  %v877_v21 = vld [vmem:[%s2155_s2] sm:$0xff] }
  0x2e   : > { %1474 = vmatprep.subr.mxu0 %v316_v31  ;;  %1526 = vmatprep.subr.mxu1 %v730_v33 }
  0x2f   : > { %1475 = vmatpush3.msra.mxu0 %v316_v31  ;;  %1527 = vmatpush3.msra.mxu1 %v730_v33  ;;  %v296_v25 = vrot.slane %v281_v23, %v1791_v14  ;;  %v709_v29 = vmin.f32 %v708_v26, 7.0 }
  0x30   : > { %1476 = vmatprep.subr.mxu0 %v315_v32  ;;  %1529 = vmatmul.mubr.msk.f32.vlgmr.msra.gmra.mxu1 %vm739_vm1, %v732_v34 }
  0x31   : > { %1477 = vmatpush3.msra.mxu0 %v315_v32  ;;  %1531 = vmatprep.mubr.msk.f32.mxu1 %vm739_vm1, %v733_v36  ;;  %v298_v27 = vsub.f32 %v292_v17, %v296_v25  ;;  %v297_v28 = vsub.f32 %v1795_v18, %v296_v25  ;;  %v718_v32 = vrot.slane %v709_v29, %v1791_v14 }
  0x32   : > { %1479 = vmatmul.mubr.msk.f32.vlgmr.msra.gmra.mxu0 %vm349_vm0, %v318_v35  ;;  %1540 = vmatprep.subr.mxu1 %v1674_v10 }
  0x33   : > { %1481 = vmatprep.mubr.msk.f32.mxu0 %vm349_vm0, %v319_v37  ;;  %v300_v30 = vand.u32 2147483647, %v298_v27  ;;  %v299_v31 = vand.u32 2147483647, %v297_v28  ;;  %v719_v35 = vsub.f32 %v1795_v18, %v718_v32 }
  0x34   : > { %1532 = vmatmul.mubr.msk.f32.gmra.mxu1 %vm739_vm1, %v734_v38 }
  0x35   : > { %1534 = vmatprep.mubr.msk.f32.mxu1 %vm739_vm1, %v735_v40  ;;  %v302_v33 = vsub.f32 1.0, %v300_v30  ;;  %v301_v34 = vsub.f32 1.0, %v299_v31 }
  0x36   : > { %1482 = vmatmul.mubr.msk.f32.gmra.mxu0 %vm349_vm0, %v320_v39  ;;  %v720_v39 = vand.u32 2147483647, %v719_v35  ;;  %v1022_v35 = vmul.f32 4.0, %v1959_v13 }
  0x37   : > { %1484 = vmatprep.mubr.msk.f32.mxu0 %vm349_vm0, %v321_v41  ;;  %v1969_v36 = vmax.f32 %v302_v33, 0.0  ;;  %v1971_v37 = vmax.f32 %v301_v34, 0.0 }
  0x38   : > { %1535 = vmatmul.mubr.msk.f32.gmra.mxu1 %vm739_vm1, %v736_v42 }
  0x39   : > { %1537 = vmatprep.mubr.msk.f32.mxu1 %vm739_vm1, %v737_v44 }
  0x3a   : > { %1485 = vmatmul.mubr.msk.f32.gmra.mxu0 %vm349_vm0, %v322_v43 }
  0x3b   : > { %1487 = vmatprep.mubr.msk.f32.mxu0 %vm349_vm0, %v323_v45  ;;  %v721_v45 = vsub.f32 1.0, %v720_v39 }
  0x3c   : > { %1538 = vmatmul.mubr.msk.f32.gmra.mxu1 %vm739_vm1, %v738_v46 }
  0x3d   : > { %1556 = vmatprep.mubr.msk.f32.mxu1 %vm1675_vm2, %v1674_v10 }
  0x3e   : > { %1488 = vmatmul.mubr.msk.f32.gmra.mxu0 %vm349_vm0, %v324_v47 }
  0x3f   : > { %1490 = vmatprep.mubr.msk.f32.mxu0 %vm349_vm0, %v325_v48 }
  0x42   : > { %1491 = vmatmul.mubr.msk.f32.gmra.mxu0 %vm349_vm0, %v326_v49 }
  0x43   : > { %1493 = vmatprep.mubr.msk.f32.mxu0 %vm349_vm0, %v327_v50 }
  0x46   : > { %1494 = vmatmul.mubr.msk.f32.gmra.mxu0 %vm349_vm0, %v328_v51  ;;  %v722_v51 = vmax.f32 %v721_v45, 0.0  ;;  %v1141_v45 = vmul.f32 2.0, %v1959_v13 }
  0x47   : > { %1496 = vmatprep.mubr.msk.f32.mxu0 %vm349_vm0, %v329_v52 }
  0x4a   : > { %1497 = vmatmul.mubr.msk.f32.gmra.mxu0 %vm349_vm0, %v330_v53 }
  0x4b   : > { %1499 = vmatprep.mubr.msk.f32.mxu0 %vm349_vm0, %v331_v54 }
  0x4e   : > { %1500 = vmatmul.mubr.msk.f32.gmra.mxu0 %vm349_vm0, %v332_v55 }
  0x4f   : > { %1502 = vmatprep.mubr.msk.f32.mxu0 %vm349_vm0, %v333_v56 }
  0x52   : > { %1503 = vmatmul.mubr.msk.f32.gmra.mxu0 %vm349_vm0, %v334_v57 }
  0x53   : > { %1505 = vmatprep.mubr.msk.f32.mxu0 %vm349_vm0, %v335_v58 }
  0x56   : > { %1506 = vmatmul.mubr.msk.f32.gmra.mxu0 %vm349_vm0, %v336_v59 }
  0x57   : > { %1508 = vmatprep.mubr.msk.f32.mxu0 %vm349_vm0, %v337_v60 }
  0x5a   : > { %1509 = vmatmul.mubr.msk.f32.gmra.mxu0 %vm349_vm0, %v338_v61 }
  0x5b   : > { %1511 = vmatprep.mubr.msk.f32.mxu0 %vm349_vm0, %v339_v62 }
  0x5e   : > { %1512 = vmatmul.mubr.msk.f32.gmra.mxu0 %vm349_vm0, %v340_v63 }
  0x5f   : > { %1514 = vmatprep.mubr.msk.f32.mxu0 %vm349_vm0, %v341_v0 }
  0x62   : > { %1515 = vmatmul.mubr.msk.f32.gmra.mxu0 %vm349_vm0, %v342_v1 }
  0x63   : > { %1517 = vmatprep.mubr.msk.f32.mxu0 %vm349_vm0, %v343_v2 }
  0x66   : > { %1518 = vmatmul.mubr.msk.f32.gmra.mxu0 %vm349_vm0, %v344_v3 }
  0x67   : > { %1520 = vmatprep.mubr.msk.f32.mxu0 %vm349_vm0, %v345_v5 }
  0x6a   : > { %1521 = vmatmul.mubr.msk.f32.gmra.mxu0 %vm349_vm0, %v346_v7 }
  0x6b   : > { %1523 = vmatprep.mubr.msk.f32.mxu0 %vm349_vm0, %v347_v8 }
  0x6e   : > { %1524 = vmatmul.mubr.msk.f32.gmra.mxu0 %vm349_vm0, %v348_v9 }
  0xf0   : > { %v1530_v38 = vpop.f32.mrf.mxu1 }
  0xf1   : > { %v870_v12 = vmul.f32 %v1530_v38, %v722_v51  ;;  %v1027_v38 = vmul.f32 4.0, %v1781_v4 }
  0xf2   : > { %v1480_v40 = vpop.f32.mrf.mxu0  ;;  %v830_v41 = vpop.f32.mrf.mxu1 }
  0xf3   : > { %v1974_v17 = vmul.f32 %v1480_v40, %v1969_v36  ;;  %v869_v16 = vmul.f32 %v830_v41, %v722_v51  ;;  %v1372_v41 = vadd.f32 -1.0, %v1022_v35 }
  0xf4   : > { %v512_v42 = vpop.f32.mrf.mxu0  ;;  %v1533_v44 = vpop.f32.mrf.mxu1 }
  0xf5   : > { %v1977_v43 = vmul.f32 %v512_v42, %v1971_v37  ;;  %v872_v5 = vmul.f32 %v1533_v44, %v722_v51  ;;  %v1373_v42 = vadd.f32 -1.0, %v1027_v38 }
  0xf6   : > { %v1483_v46 = vpop.f32.mrf.mxu0  ;;  %v840_v47 = vpop.f32.mrf.mxu1 }
  0xf7   : > { %v1980_v18 = vmul.f32 %v1483_v46, %v1969_v36  ;;  %v871_v8 = vmul.f32 %v840_v47, %v722_v51  ;;  %v1146_v46 = vmul.f32 2.0, %v1781_v4 }
  0xf8   : > { %v522_v48 = vpop.f32.mrf.mxu0  ;;  %v1536_v50 = vpop.f32.mrf.mxu1 }
  0xf9   : > { %v1983_v49 = vmul.f32 %v522_v48, %v1971_v37  ;;  %v874_v63 = vmul.f32 %v1536_v50, %v722_v51  ;;  %v1024_v48 = vmul.f32 0.5, %v1372_v41  ;;  %v1029_v50 = vmul.f32 0.5, %v1373_v42 }
  0xfa   : > { %v1486_v52 = vpop.f32.mrf.mxu0  ;;  %v850_v54 = vpop.f32.mrf.mxu1  ;;  %v1036_v42 = vand.u32 3, %v1784_v6 }
  0xfb   : > { %v1986_v53 = vmul.f32 %v1486_v52, %v1969_v36  ;;  %v873_v3 = vmul.f32 %v850_v54, %v722_v51  ;;  %v1375_v52 = vadd.f32 -1.0, %v1141_v45  ;;  %v1376_v54 = vadd.f32 -1.0, %v1146_v46 }
  0xfc   : > { %v532_v55 = vpop.f32.mrf.mxu0  ;;  %v1539_v57 = vpop.f32.mrf.mxu1 }
  0xfd   : > { %v1989_v56 = vmul.f32 %v532_v55, %v1971_v37  ;;  %v876_v59 = vmul.f32 %v1539_v57, %v722_v51  ;;  %v1143_v4 = vmul.f32 0.5, %v1375_v52  ;;  %v1038_v52 = vcvt.s32.f32 %v1036_v42 }
  0xfe   : > { %v1489_v58 = vpop.f32.mrf.mxu0  ;;  %v860_v61 = vpop.f32.mrf.mxu1 }
  0xff   : > { %v1992_v60 = vmul.f32 %v1489_v58, %v1969_v36  ;;  %v875_v0 = vmul.f32 %v860_v61, %v722_v51  ;;  %1541 = vmatpush3.msra.mxu1 %v876_v59  ;;  %v1025_v61 = vmax.f32 %v1024_v48, 0.0  ;;  %v1153_v48 = vand.u32 1, %v1784_v6 }
 0x100   : > { %v542_v62 = vpop.f32.mrf.mxu0  ;;  %1542 = vmatprep.subr.mxu1 %v1674_v10 }
 0x101   : > { %v1995_v1 = vmul.f32 %v542_v62, %v1971_v37  ;;  %1543 = vmatpush3.msra.mxu1 %v875_v0  ;;  %v1030_v62 = vmax.f32 %v1029_v50, 0.0 }
 0x102   : > { %v1998_v2 = vpop.f32.mrf.mxu0  ;;  %1544 = vmatprep.subr.mxu1 %v1674_v10 }
 0x103   : > { %1545 = vmatpush3.msra.mxu1 %v874_v63  ;;  %v1148_v63 = vmul.f32 0.5, %v1376_v54 }
 0x104   : > { %v2001_v7 = vpop.f32.mrf.mxu0  ;;  %1546 = vmatprep.subr.mxu1 %v1674_v10 }
 0x105   : > { %1547 = vmatpush3.msra.mxu1 %v873_v3  ;;  %v1033_v3 = vshra.s32 %v1788_v11, 2 }
 0x106   : > { %v2004_v9 = vpop.f32.mrf.mxu0  ;;  %1548 = vmatprep.subr.mxu1 %v1674_v10 }
 0x107   : > { %1549 = vmatpush3.msra.mxu1 %v872_v5  ;;  %v1035_v38 = vcvt.s32.f32 %v1033_v3 }
 0x108   : > { %v2007_v15 = vpop.f32.mrf.mxu0  ;;  %1550 = vmatprep.subr.mxu1 %v1674_v10 }
 0x109   : > { %1551 = vmatpush3.msra.mxu1 %v871_v8  ;;  %v1037_v8 = vand.u32 3, %v1788_v11  ;;  %v1032_v11 = vshra.s32 %v1784_v6, 2  ;;  %v681_v46 = vmul.f32 %v2007_v15, %v1971_v37 }
 0x10a   : > { %v1498_v19 = vpop.f32.mrf.mxu0  ;;  %1552 = vmatprep.subr.mxu1 %v1674_v10 }
 0x10b   : > { %1553 = vmatpush3.msra.mxu1 %v870_v12  ;;  %v684_v5 = vmul.f32 %v1498_v19, %v1969_v36  ;;  %v682_v19 = vmul.f32 %v2004_v9, %v1969_v36  ;;  %v1039_v41 = vcvt.s32.f32 %v1037_v8 }
 0x10c   : > { %v572_v20 = vpop.f32.mrf.mxu0  ;;  %1554 = vmatprep.subr.mxu1 %v1674_v10 }
 0x10d   : > { %1555 = vmatpush3.msra.mxu1 %v869_v16  ;;  %v1026_v16 = vmin.f32 %v1025_v61, 3.0 }
 0x10e   : > { %v1501_v23 = vpop.f32.mrf.mxu0  ;;  %1557 = vmatmul.mubr.msk.f32.vlgmr.msra.gmra.mxu1 %vm878_vm3, %v877_v21  ;;  %v1031_v21 = vmin.f32 %v1030_v62, 3.0 }
 0x10f   : > { %1016 = vmatprep.mubr.f32.mxu1 %v704_v22  ;;  %v686_v57 = vmul.f32 %v1501_v23, %v1969_v36  ;;  %v683_v22 = vmul.f32 %v572_v20, %v1971_v37  ;;  %v1144_v23 = vmax.f32 %v1143_v4, 0.0  ;;  %v1055_v45 = vrot.slane %v1026_v16, %v1791_v14 }
 0x110   : > { %v582_v24 = vpop.f32.mrf.mxu0  ;;  %v1043_v20 = vrot.slane %v1031_v21, %v1791_v14 }
 0x111   : > { %v685_v13 = vmul.f32 %v582_v24, %v1971_v37  ;;  %v1149_v24 = vmax.f32 %v1148_v63, 0.0  ;;  %v1145_v9 = vmin.f32 %v1144_v23, 1.0  ;;  %v1057_v15 = vsub.f32 %v1039_v41, %v1055_v45 }
 0x112   : > { %v2018_v25 = vpop.f32.mrf.mxu0 }
 0x113   : > { %v688_v23 = vmul.f32 %v2018_v25, %v1969_v36 }
 0x114   : > { %v2020_v26 = vpop.f32.mrf.mxu0 }
 0x116   : > { %v2022_v27 = vpop.f32.mrf.mxu0 }
 0x118   : > { %v2024_v28 = vpop.f32.mrf.mxu0 }
 0x119   : > { %v689_v16 = vmul.f32 %v2024_v28, %v1971_v37 }
 0x11a   : > { %v2026_v29 = vpop.f32.mrf.mxu0 }
 0x11c   : > { %v2028_v30 = vpop.f32.mrf.mxu0 }
 0x11d   : > { %v691_v3 = vmul.f32 %v2028_v30, %v1971_v37 }
 0x11e   : > { %v2030_v31 = vpop.f32.mrf.mxu0 }
 0x120   : > { %v2032_v32 = vpop.f32.mrf.mxu0 }
 0x121   : > { %v693_v62 = vmul.f32 %v2032_v32, %v1971_v37 }
 0x122   : > { %v1516_v33 = vpop.f32.mrf.mxu0 }
 0x123   : > { %v696_v50 = vmul.f32 %v1516_v33, %v1969_v36 }
 0x124   : > { %v2034_v34 = vpop.f32.mrf.mxu0 }
 0x125   : > { %v695_v54 = vmul.f32 %v2034_v34, %v1971_v37  ;;  %v1056_v34 = vsub.f32 %v1038_v52, %v1055_v45 }
 0x126   : > { %v1519_v39 = vpop.f32.mrf.mxu0 }
 0x127   : > { %v698_v35 = vmul.f32 %v1519_v39, %v1969_v36  ;;  %v1151_v39 = vshra.s32 %v1784_v6, 1  ;;  %v1154_v6 = vcvt.s32.f32 %v1153_v48 }
 0x128   : > { %v642_v40 = vpop.f32.mrf.mxu0 }
 0x12a   : > { %v1522_v44 = vpop.f32.mrf.mxu0 }
 0x12b   : > { %v700_v0 = vmul.f32 %v1522_v44, %v1969_v36  ;;  %v697_v44 = vmul.f32 %v642_v40, %v1971_v37  ;;  %v680_v40 = vmul.f32 %v1998_v2, %v1969_v36  ;;  %v694_v2 = vmul.f32 %v2030_v31, %v1969_v36 }
 0x12c   : > { %v652_v47 = vpop.f32.mrf.mxu0 }
 0x12d   : > { %v699_v12 = vmul.f32 %v652_v47, %v1971_v37  ;;  %v1150_v47 = vmin.f32 %v1149_v24, 1.0  ;;  %v687_v24 = vmul.f32 %v2020_v26, %v1971_v37 }
 0x12e   : > { %v1525_v51 = vpop.f32.mrf.mxu0 }
 0x12f   : > { %v702_v55 = vmul.f32 %v1525_v51, %v1969_v36  ;;  %v1034_v51 = vcvt.s32.f32 %v1032_v11  ;;  %v1158_v33 = vrot.slane %v1150_v47, %v1791_v14 }
 0x130   : > { %v662_v58 = vpop.f32.mrf.mxu0 }
 0x131   : > { %v701_v59 = vmul.f32 %v662_v58, %v1971_v37  ;;  %1434 = vmatprep.subr.mxu1 %v702_v55  ;;  %v1045_v55 = vsub.f32 %v1035_v38, %v1043_v20  ;;  %v679_v58 = vmul.f32 %v2001_v7, %v1971_v37  ;;  %v1044_v61 = vsub.f32 %v1034_v51, %v1043_v20  ;;  %v1066_v37 = vld [vmem:[%s2156_s3] sm:$0xff] }
 0x132   : > { %1435 = vmatpush3.msra.mxu1 %v686_v57  ;;  %v1152_v57 = vcvt.s32.f32 %v1151_v39 }
 0x133   : > { %1436 = vmatprep.subr.mxu1 %v701_v59  ;;  %v1166_v59 = vrot.slane %v1145_v9, %v1791_v14  ;;  %v1047_v7 = vand.u32 2147483647, %v1045_v55  ;;  %v692_v14 = vmul.f32 %v2026_v29, %v1969_v36  ;;  %v1046_v31 = vand.u32 2147483647, %v1044_v61 }
 0x134   : > { %1437 = vmatpush3.msra.mxu1 %v685_v13  ;;  %v1059_v13 = vand.u32 2147483647, %v1057_v15  ;;  %v1159_v4 = vsub.f32 %v1152_v57, %v1158_v33 }
 0x135   : > { %1438 = vmatprep.subr.mxu1 %v700_v0  ;;  %v1167_v63 = vsub.f32 %v1154_v6, %v1166_v59  ;;  %v1058_v0 = vand.u32 2147483647, %v1056_v34  ;;  %v1049_v32 = vsub.f32 1.0, %v1047_v7  ;;  %v1048_v29 = vsub.f32 1.0, %v1046_v31 }
 0x136   : > { %1439 = vmatpush3.msra.mxu1 %v684_v5  ;;  %v1160_v5 = vand.u32 2147483647, %v1159_v4 }
 0x137   : > { %1440 = vmatprep.subr.mxu1 %v699_v12  ;;  %v1168_v8 = vand.u32 2147483647, %v1167_v63  ;;  %v690_v12 = vmul.f32 %v2022_v27, %v1969_v36  ;;  %v1051_v30 = vmax.f32 %v1049_v32, 0.0  ;;  %v1050_v27 = vmax.f32 %v1048_v29, 0.0 }
 0x138   : > { %1441 = vmatpush3.msra.mxu1 %v683_v22  ;;  %v1161_v21 = vsub.f32 1.0, %v1160_v5 }
 0x139   : > { %1442 = vmatprep.subr.mxu1 %v698_v35  ;;  %v1169_v22 = vsub.f32 1.0, %v1168_v8 }
 0x13a   : > { %1443 = vmatpush3.msra.mxu1 %v682_v19  ;;  %v1162_v35 = vmax.f32 %v1161_v21, 0.0 }
 0x13b   : > { %1444 = vmatprep.subr.mxu1 %v697_v44  ;;  %v1170_v38 = vmax.f32 %v1169_v22, 0.0 }
 0x13c   : > { %1445 = vmatpush3.msra.mxu1 %v681_v46 }
 0x13d   : > { %1446 = vmatprep.subr.mxu1 %v696_v50 }
 0x13e   : > { %1447 = vmatpush3.msra.mxu1 %v680_v40 }
 0x13f   : > { %1448 = vmatprep.subr.mxu1 %v695_v54 }
 0x140   : > { %1449 = vmatpush3.msra.mxu1 %v679_v58 }
 0x141   : > { %1450 = vmatprep.subr.mxu1 %v694_v2 }
 0x142   : > { %1451 = vmatpush3.msra.mxu1 %v1992_v60  ;;  %v1061_v60 = vsub.f32 1.0, %v1059_v13 }
 0x143   : > { %1452 = vmatprep.subr.mxu1 %v693_v62 }
 0x144   : > { %1453 = vmatpush3.msra.mxu1 %v1995_v1  ;;  %v1060_v1 = vsub.f32 1.0, %v1058_v0 }
 0x145   : > { %1454 = vmatprep.subr.mxu1 %v692_v14 }
 0x146   : > { %1455 = vmatpush3.msra.mxu1 %v1986_v53  ;;  %v1063_v53 = vmax.f32 %v1061_v60, 0.0 }
 0x147   : > { %1456 = vmatprep.subr.mxu1 %v691_v3 }
 0x148   : > { %1457 = vmatpush3.msra.mxu1 %v1989_v56  ;;  %v1062_v56 = vmax.f32 %v1060_v1, 0.0  ;;  %v1065_v28 = vmul.f32 %v1063_v53, %v1051_v30 }
 0x149   : > { %1458 = vmatprep.subr.mxu1 %v690_v12 }
 0x14a   : > { %1459 = vmatpush3.msra.mxu1 %v1980_v18  ;;  %v703_v18 = vld [vmem:[%s2154_s1] sm:$0xff]  ;;  %v1064_v36 = vmul.f32 %v1062_v56, %v1050_v27 }
 0x14b   : > { %1460 = vmatprep.subr.mxu1 %v689_v16 }
 0x14c   : > { %1461 = vmatpush3.msra.mxu1 %v1983_v49 }
 0x14d   : > { %1462 = vmatprep.subr.mxu1 %v688_v23 }
 0x14e   : > { %1463 = vmatpush3.msra.mxu1 %v1974_v17  ;;  %v1171_v17 = vmul.f32 %v1170_v38, %v1162_v35 }
 0x14f   : > { %1464 = vmatprep.subr.mxu1 %v687_v24 }
 0x150   : > { %1465 = vmatpush3.msra.mxu1 %v1977_v43  ;;  %v1172_v43 = vld [vmem:[%s2157_s4] sm:$0xff] }
 0x151   : > { %1017 = vmatmul.mubr.f32.vlgmr.msra.gmra.mxu1 %v703_v18  ;;  %1559 = vmatprep.subr.mxu1 %v1674_v10 }
 0x152   : > { %1560 = vmatpush3.msra.mxu1 %v1065_v28  ;;  %1563 = vmatprep.mubr.msk.f32.mxu1 %vm1675_vm2, %v1674_v10 }
 0x153   : > { %1561 = vmatprep.subr.mxu1 %v1674_v10 }
 0x154   : > { %1562 = vmatpush3.msra.mxu1 %v1064_v36 }
 0x155   : > { %1564 = vmatmul.mubr.msk.f32.vlgmr.msra.gmra.mxu1 %vm349_vm0, %v1066_v37  ;;  %1566 = vmatprep.subr.mxu1 %v1674_v10 }
 0x156   : > { %1567 = vmatpush3.msra.mxu1 %v1171_v17  ;;  %1568 = vmatprep.mubr.msk.f32.mxu1 %vm1675_vm2, %v1674_v10 }
 0x159   : > { %1569 = vmatmul.mubr.msk.f32.vlgmr.msra.gmra.mxu1 %vm739_vm1, %v1172_v43 }
 0x1ce   : > { %v948_v49 = vpop.f32.mrf.mxu1 }
 0x1d0   : > { %v1558_v25 = vpop.f32.mrf.mxu1 }
 0x211   : > { %v1466_v26 = vpop.f32.mrf.mxu1 }
 0x213   : > { %v1467_v19 = vpop.f32.mrf.mxu1 }
 0x214   : > { %v1468_v41 = vadd.f32 %v1467_v19, %v1466_v26 }
 0x215   : > { %v1136_v11 = vpop.f32.mrf.mxu1 }
 0x216   : > { %v1019_v42 = vadd.f32 %v1468_v41, %v948_v49 }
 0x217   : > { %v1565_v44 = vpop.f32.mrf.mxu1 }
 0x218   : > { %v1140_v10 = vadd.f32 %v1136_v11, %v1019_v42 }
 0x219   : > { %v1242_v20 = vpop.f32.mrf.mxu1 }
 0x21a   : > { %v1246_v45 = vadd.f32 %v1242_v20, %v1140_v10 }
 0x21b   : > { %v1570_v39 = vpop.f32.mrf.mxu1 }
 0x21c   : > { %1247 = vst [vmem:[%s269_s18] sm:$0xff] %v1246_v45 }
 0x21d   : > { %1625 = shalt.err (!%p1622_p3)
}
 0x21e   : > { %s1626_s13 = scalar_lea.hbm %s2118_s22, 128  ;;  %s1630_s16 = scalar_lea.hbm %s2160_s7, 256 }
 0x21f   : > { %p1627_p4 = scmp.ne.s32.totalorder %s2118_s22, %s1626_s13  ;;  %p1631_p9 = scmp.lt.s32.totalorder %s2118_s22, %s2160_s7 }
 0x220   : > { %p1632_p10 = scmp.lt.s32.totalorder %s1630_s16, %s1626_s13 }
 0x221   : > { %p1628_p7 = pnand %p1627_p4, %p1755_p5 }
 0x222   : > { %p1633_p11 = por %p1632_p10, %p1631_p9 }
 0x223   : > { %p1629_p8 = pneg %p1628_p7 }
 0x225   : > { %p1634_p12 = pnand %p1633_p11, %p1629_p8 }
 0x227   : > { %1637 = shalt.err (!%p1634_p12)
}
 0x228   : > { %1571 = dma.vmem_to_hbm [thread:$0]  (%p1755_p5), %s1263_s21, 128, %s2118_s22, %s1249_s23  }
 0x229 PF: > { %p1577_p13 = scmp.ge.s32.totalorder %s1672_s27, 2  ;;  %s1274_s19 = sand.u32 1, %s1660_s24  }
 0x22a   : > { %s1275_s20 = scalar_lea.sflag [#allocation3], %s1274_s19 }
 0x22b   : > { %p1574_p0 = pnand %p1577_p13, %p1759_p6 }
 0x22d   : > { %p1575_p1 = pneg %p1574_p0 }
 0x22f   : > { %1655 = dma.done.wait (%p1575_p1), %s1275_s20, 128  }
 0x230   : > { %1657 = vsyncadd (%p1575_p1), %s1275_s20, 4294967168  ;;  %p17_p2 = scmp.ge.s32.totalorder %s1742_s30, 4   ;;  %s2163_s24 = smov %s1664_s25 }
 0x231   : > { %s2164_s25 = smov %s1668_s26  ;;  %s2165_s26 = smov %s1753_s10 }
 0x232   : > { %s2166_s27 = smov %s1742_s30  ;;  %19 = sbr.rel (!%p17_p2) target bundleno = 3 (0x3), region = 83 }
 0x237   :  { %1280 = vsyncpa [#allocation3], 1 }
 0x238   :  { %1282 = vsyncpa [#allocation3 + $0x1], 1 }

</bundles_post_ra>
